<compile_context>
chip_gen: v7x
topology: tpu7x:2x2x1
jax: 0.10.0
libtpu: 0.0.40
codegen_flags: <defaults>
</compile_context>

<pallas_src>
import math

import jax
import jax.numpy as jnp
from jax import lax
from jax.experimental import pallas as pl
from jax.experimental.pallas import tpu as pltpu

_INV_SQRT2 = 0.7071067811865476  # hoisted 1/sqrt(2)


def _gelu_exact(x):
    # PyTorch nn.GELU() default = exact erf formulation.  Keep the math in f32
    # (v5e has no bf16 VPU/EUP); erf lowers to the EUP (free bundle slot).
    return 0.5 * x * (1.0 + lax.erf(x * jnp.float32(_INV_SQRT2)))


def task_layer_kernel(x_ref, w0_ref, b0_ref, w1_ref, b1_ref, out_ref, emb_ref):
    # ---- Linear 0 (H -> E) on the MXU: bf16 x bf16 with f32 accumulate. ----
    emb_f32 = jnp.dot(x_ref[...], w0_ref[...],
                      preferred_element_type=jnp.float32)            # [TM, E] f32
    emb_f32 = emb_f32 + b0_ref[...]                                  # + bias (f32 row)
    emb_bf16 = emb_f32.astype(jnp.bfloat16)
    emb_ref[...] = emb_bf16                                          # [TM, E] bf16

    # ---- Dropout (eval mode -> identity), exact GELU on the stored bf16 emb. ----
    act = _gelu_exact(emb_bf16.astype(jnp.float32))                  # [TM, E] f32

    # ---- Linear 1 (E -> 1): VPU multiply + lane reduce (skip N=1 MXU matmul). ----
    out_col = jnp.sum(act * w1_ref[...], axis=-1, keepdims=True)     # [TM, 1] f32
    out_ref[...] = (out_col + b1_ref[0, 0]).astype(jnp.bfloat16)


def _round_up(a, b):
    return ((a + b - 1) // b) * b


def task_layer(x, w0, b0, w1, b1, *, tm_max=1024):
    """x: [M, H] bf16; w0: [H, E] bf16; b0: [E] bf16; w1: [E, 1] bf16; b1: [1] bf16."""
    M, H = x.shape
    E = w0.shape[1]

    # Row tile: multiple of 8 sublanes, capped so double-buffered x/emb/out tiles
    # stay far below the scoped-VMEM default on v5e/v6e/v7x.
    tm = min(tm_max, _round_up(M, 8))
    M_pad = _round_up(M, tm)
    if M_pad != M:
        x = jnp.pad(x, ((0, M_pad - M), (0, 0)))

    grid = (M_pad // tm,)

    # Cast the tiny bias / second-layer weight rows to f32 once in the wrapper so
    # the kernel does no per-tile casting of VMEM-resident constants.
    b0_row = b0.astype(jnp.float32).reshape(1, E)
    w1_row = jnp.reshape(w1, (1, E)).astype(jnp.float32)  # (E,1) -> (1,E) for VPU bcast
    b1_smem = b1.astype(jnp.float32).reshape(1, 1)        # scalar bias lives in SMEM

    cost = pl.CostEstimate(
        flops=2 * M_pad * E * (H + 1),
        transcendentals=M_pad * E,
        bytes_accessed=(2 * (M_pad * H + H * E + M_pad * E + M_pad)
                        + 4 * (2 * E + 1)),
    )

    out, emb = pl.pallas_call(
        task_layer_kernel,
        out_shape=(
            jax.ShapeDtypeStruct((M_pad, 1), jnp.bfloat16),   # out
            jax.ShapeDtypeStruct((M_pad, E), jnp.bfloat16),   # embedding
        ),
        grid_spec=pltpu.PrefetchScalarGridSpec(
            num_scalar_prefetch=0,
            grid=grid,
            in_specs=[
                pl.BlockSpec((tm, H), lambda i: (i, 0)),            # x row tile (pipelined)
                pl.BlockSpec((H, E), lambda i: (0, 0)),             # w0 (VMEM-resident)
                pl.BlockSpec((1, E), lambda i: (0, 0)),             # b0 row (f32)
                pl.BlockSpec((1, E), lambda i: (0, 0)),             # w1 row (f32)
                pl.BlockSpec(memory_space=pltpu.MemorySpace.SMEM),  # b1 scalar
            ],
            out_specs=[
                pl.BlockSpec((tm, 1), lambda i: (i, 0)),
                pl.BlockSpec((tm, E), lambda i: (i, 0)),
            ],
        ),
        compiler_params=pltpu.CompilerParams(
            dimension_semantics=("parallel",)),
        cost_estimate=cost,
    )(x, w0, b0_row, w1_row, b1_smem)

    return out[:M], emb[:M]


if __name__ == "__main__":
    # Small shapes consistent with the module: batch=2, seq=8, hidden=32, embedding=128.
    B, S, H, E = 2, 8, 32, 128
    key = jax.random.PRNGKey(0)
    kx, kw0, kb0, kw1, kb1 = jax.random.split(key, 5)

    # Deterministic synthetic parameters (nn.Linear-style uniform init).
    bound0 = 1.0 / math.sqrt(H)
    bound1 = 1.0 / math.sqrt(E)
    x = jax.random.normal(kx, (B, S, H), dtype=jnp.float32).astype(jnp.bfloat16)
    w0 = jax.random.uniform(kw0, (H, E), minval=-bound0, maxval=bound0).astype(jnp.bfloat16)
    b0 = jax.random.uniform(kb0, (E,), minval=-bound0, maxval=bound0).astype(jnp.bfloat16)
    w1 = jax.random.uniform(kw1, (E, 1), minval=-bound1, maxval=bound1).astype(jnp.bfloat16)
    b1 = jax.random.uniform(kb1, (1,), minval=-bound1, maxval=bound1).astype(jnp.bfloat16)

    # Flatten leading dims (nn.Linear acts on the last dim).
    x2d = x.reshape(B * S, H)
    out2d, emb2d = task_layer(x2d, w0, b0, w1, b1)
    out = out2d.reshape(B, S, 1)
    emb = emb2d.reshape(B, S, E)
    jax.block_until_ready((out, emb))

    # Reference check against plain JAX (bf16 params, f32 accumulation).
    def ref(x2d):
        e = (x2d.astype(jnp.float32) @ w0.astype(jnp.float32)
             + b0.astype(jnp.float32)).astype(jnp.bfloat16)
        a = _gelu_exact(e.astype(jnp.float32))
        o = (a @ w1.astype(jnp.float32) + b1.astype(jnp.float32)).astype(jnp.bfloat16)
        return o, e

    o_ref, e_ref = ref(x2d)
    assert jnp.allclose(out2d.astype(jnp.float32), o_ref.astype(jnp.float32),
                        atol=2e-2, rtol=2e-2)
    assert jnp.allclose(emb2d.astype(jnp.float32), e_ref.astype(jnp.float32),
                        atol=2e-2, rtol=2e-2)
    print("KERNEL_OK")
</pallas_src>

<mosaic_0001>
module attributes {stable_mosaic.version = 11 : i64} {
  func.func @task_layer_kernel(%arg0: i32, %arg1: memref<16x32xbf16, #tpu.memory_space<vmem>>, %arg2: memref<32x128xbf16, #tpu.memory_space<vmem>>, %arg3: memref<1x128xf32, #tpu.memory_space<vmem>>, %arg4: memref<1x128xf32, #tpu.memory_space<vmem>>, %arg5: memref<1x1xf32, #tpu.memory_space<smem>>, %arg6: memref<16x1xbf16, #tpu.memory_space<vmem>>, %arg7: memref<16x128xbf16, #tpu.memory_space<vmem>>) attributes {dimension_semantics = [#tpu.dimension_semantics<parallel>], iteration_bounds = array<i64: 1>, scalar_prefetch = 0 : i64, scratch_operands = 0 : i64, tpu.core_type = #tpu.core_type<tc>, window_params = [{transform_indices = @transform_0, window_bounds = array<i64: 16, 32>}, {pipeline_mode = #tpu.pipeline_mode<synchronous>, transform_indices = @transform_1, window_bounds = array<i64: 32, 128>}, {pipeline_mode = #tpu.pipeline_mode<synchronous>, transform_indices = @transform_2, window_bounds = array<i64: 1, 128>}, {pipeline_mode = #tpu.pipeline_mode<synchronous>, transform_indices = @transform_3, window_bounds = array<i64: 1, 128>}, {transform_indices = @transform_4, window_bounds = array<i64: 1, 1>}, {transform_indices = @transform_5, window_bounds = array<i64: 16, 1>}, {transform_indices = @transform_6, window_bounds = array<i64: 16, 128>}]} {
    %c0 = arith.constant 0 : index
    %c0_0 = arith.constant 0 : index
    %0 = vector.load %arg1[%c0, %c0_0] : memref<16x32xbf16, #tpu.memory_space<vmem>>, vector<16x32xbf16>
    %c0_1 = arith.constant 0 : index
    %c0_2 = arith.constant 0 : index
    %1 = vector.load %arg2[%c0_1, %c0_2] : memref<32x128xbf16, #tpu.memory_space<vmem>>, vector<32x128xbf16>
    %cst = arith.constant dense<0.000000e+00> : vector<16x128xf32>
    %2 = tpu.matmul %0, %1, %cst {dimension_numbers = #tpu.dot_dimension_numbers<[1], [0], [0], [1], [0, 0, 1, 1], [], []>} : vector<16x32xbf16>, vector<32x128xbf16>, vector<16x128xf32> -> vector<16x128xf32>
    %c0_3 = arith.constant 0 : index
    %c0_4 = arith.constant 0 : index
    %3 = vector.load %arg3[%c0_3, %c0_4] : memref<1x128xf32, #tpu.memory_space<vmem>>, vector<1x128xf32>
    %4 = vector.broadcast %3 : vector<1x128xf32> to vector<16x128xf32>
    %5 = arith.addf %2, %4 : vector<16x128xf32>
    %6 = arith.truncf %5 : vector<16x128xf32> to vector<16x128xbf16>
    %c0_5 = arith.constant 0 : index
    %c0_6 = arith.constant 0 : index
    %7 = vector.load %arg7[%c0_5, %c0_6] : memref<16x128xbf16, #tpu.memory_space<vmem>>, vector<16x128xbf16>
    tpu.vector_store %arg7[%c0_5, %c0_6], %6 {strides = array<i32>} : memref<16x128xbf16, #tpu.memory_space<vmem>>, vector<16x128xbf16>,
    %8 = arith.extf %6 : vector<16x128xbf16> to vector<16x128xf32>
    %cst_7 = arith.constant 5.000000e-01 : f32
    %9 = vector.broadcast %cst_7 : f32 to vector<16x128xf32>
    %10 = arith.mulf %9, %8 : vector<16x128xf32>
    %cst_8 = arith.constant 0.707106769 : f32
    %11 = vector.broadcast %cst_8 : f32 to vector<16x128xf32>
    %12 = arith.mulf %8, %11 : vector<16x128xf32>
    %13 = math.erf %12 : vector<16x128xf32>
    %cst_9 = arith.constant 1.000000e+00 : f32
    %14 = vector.broadcast %cst_9 : f32 to vector<16x128xf32>
    %15 = arith.addf %14, %13 : vector<16x128xf32>
    %16 = arith.mulf %10, %15 : vector<16x128xf32>
    %c0_10 = arith.constant 0 : index
    %c0_11 = arith.constant 0 : index
    %17 = vector.load %arg4[%c0_10, %c0_11] : memref<1x128xf32, #tpu.memory_space<vmem>>, vector<1x128xf32>
    %18 = vector.broadcast %17 : vector<1x128xf32> to vector<16x128xf32>
    %19 = arith.mulf %16, %18 : vector<16x128xf32>
    %cst_12 = arith.constant dense<0.000000e+00> : vector<16xf32>
    %20 = vector.multi_reduction <add>, %19, %cst_12 [1] : vector<16x128xf32> to vector<16xf32>
    %21 = vector.shape_cast %20 : vector<16xf32> to vector<16x1xf32>
    %c0_13 = arith.constant 0 : index
    %c0_14 = arith.constant 0 : index
    %22 = memref.load %arg5[%c0_13, %c0_14] : memref<1x1xf32, #tpu.memory_space<smem>>
    %23 = vector.broadcast %22 : f32 to vector<16x1xf32>
    %24 = arith.addf %21, %23 : vector<16x1xf32>
    %25 = arith.truncf %24 : vector<16x1xf32> to vector<16x1xbf16>
    %c0_15 = arith.constant 0 : index
    %c0_16 = arith.constant 0 : index
    %26 = vector.load %arg6[%c0_15, %c0_16] : memref<16x1xbf16, #tpu.memory_space<vmem>>, vector<16x1xbf16>
    tpu.vector_store %arg6[%c0_15, %c0_16], %25 {strides = array<i32>} : memref<16x1xbf16, #tpu.memory_space<vmem>>, vector<16x1xbf16>,
    return
  }
  func.func @transform_0(%arg0: i32) -> (i32, i32) {
    %c0_i32 = arith.constant 0 : i32
    %c0_i32_0 = arith.constant 0 : i32
    return %arg0, %c0_i32 : i32, i32
  }
  func.func @transform_1(%arg0: i32) -> (i32, i32) {
    %c0_i32 = arith.constant 0 : i32
    %c0_i32_0 = arith.constant 0 : i32
    %c0_i32_1 = arith.constant 0 : i32
    return %c0_i32, %c0_i32_0 : i32, i32
  }
  func.func @transform_2(%arg0: i32) -> (i32, i32) {
    %c0_i32 = arith.constant 0 : i32
    %c0_i32_0 = arith.constant 0 : i32
    %c0_i32_1 = arith.constant 0 : i32
    return %c0_i32, %c0_i32_0 : i32, i32
  }
  func.func @transform_3(%arg0: i32) -> (i32, i32) {
    %c0_i32 = arith.constant 0 : i32
    %c0_i32_0 = arith.constant 0 : i32
    %c0_i32_1 = arith.constant 0 : i32
    return %c0_i32, %c0_i32_0 : i32, i32
  }
  func.func @transform_4(%arg0: i32) -> (i32, i32) {
    %c0_i32 = arith.constant 0 : i32
    %c0_i32_0 = arith.constant 0 : i32
    %c0_i32_1 = arith.constant 0 : i32
    return %c0_i32, %c0_i32_0 : i32, i32
  }
  func.func @transform_5(%arg0: i32) -> (i32, i32) {
    %c0_i32 = arith.constant 0 : i32
    %c0_i32_0 = arith.constant 0 : i32
    return %arg0, %c0_i32 : i32, i32
  }
  func.func @transform_6(%arg0: i32) -> (i32, i32) {
    %c0_i32 = arith.constant 0 : i32
    %c0_i32_0 = arith.constant 0 : i32
    return %arg0, %c0_i32 : i32, i32
  }
}

</mosaic_0001>

<bundles_post_ra>
// kernel: tpu_custom_call.1
= control target key start
LH: loop header
LB: loop body
LE: loop exit
PB: predicated region body
PF: predicated region fallthrough
CT: control target
= control target key end

     0   :  { %13 = vsyncpa [#allocation4], 0  ;;  %s428_s0 = inlined_call_operand.hbm [shape: bf16[16,32], index: 0, kind: input, shape index: {}]   ;;  %s429_s1 = inlined_call_operand.hbm [shape: bf16[32,128], index: 1, kind: input, shape index: {}]   ;;  %s430_s2 = inlined_call_operand.vmem [shape: f32[1,128], index: 2, kind: input, shape index: {}]   ;;  %s431_s3 = inlined_call_operand.vmem [shape: f32[1,128], index: 3, kind: input, shape index: {}]   ;;  %s432_s4 = inlined_call_operand.<no memory space> [shape: f32[1,1], index: 4, kind: input, shape index: {}]   ;;  %s433_s5 = inlined_call_operand.vmem [shape: bf16[16,1], index: 5, kind: output, shape index: {0}]   ;;  %s434_s6 = inlined_call_operand.hbm [shape: bf16[16,128], index: 6, kind: output, shape index: {1}]  }
   0x1   :  { %14 = vsyncpa [#allocation7], 0 }
   0x2   :  { %15 = vsyncpa [#allocation5], 0  ;;  %s324_s21 = smov [#allocation3]   ;;  %s252_s25 = scalar_lea.hbm %s428_s0, 128 }
   0x3   :  { %s21_s22 = sshll.u32 %s324_s21, 4  ;;  %p253_p0 = scmp.ne.s32.totalorder %s428_s0, %s252_s25  ;;  %s22_s22 = int_to_ptr.vmem [resolvable:$true] %s21_s22 }
   0x4   :  { %p256_p1 = scmp.lt.u32.totalorder %s252_s25, %s428_s0 }
   0x6   :  { %p258_p2 = pnand %p256_p1, %p253_p0 }
   0x8   :  { %261 = shalt.err (!%p258_p2)
}
   0x9   :  { %s262_s30 = scalar_lea.vmem %s22_s22, 128  ;;  %p267_p4 = scmp.lt.s32.totalorder %s22_s22, %s22_s22 }
   0xa   :  { %p263_p3 = scmp.ne.s32.totalorder %s22_s22, %s262_s30  ;;  %p268_p5 = scmp.lt.s32.totalorder %s262_s30, %s262_s30 }
   0xc   :  { %p269_p6 = por %p268_p5, %p267_p4 }
   0xe   :  { %p270_p7 = pnand %p269_p6, %p263_p3 }
  0x10   :  { %273 = shalt.err (!%p270_p7)
}
  0x11   :  { %s325_s7 = smov 64   ;;  %s326_s8 = smov 4  }
  0x12   :  { %27 = dma.hbm_to_vmem [thread:$0]  %s428_s0, 128, %s22_s22, [#allocation4], %s325_s7, %s325_s7, %s326_s8  }
  0x13   :  { %s327_s11 = smov [#allocation6]   ;;  %s274_s15 = scalar_lea.hbm %s429_s1, 256 }
  0x14   :  { %s33_s12 = sshll.u32 %s327_s11, 4  ;;  %p275_p8 = scmp.ne.s32.totalorder %s429_s1, %s274_s15  ;;  %s34_s12 = int_to_ptr.vmem [resolvable:$true] %s33_s12 }
  0x15   :  { %p278_p9 = scmp.lt.u32.totalorder %s274_s15, %s429_s1 }
  0x17   :  { %p280_p10 = pnand %p278_p9, %p275_p8 }
  0x19   :  { %283 = shalt.err (!%p280_p10)
}
  0x1a   :  { %s284_s20 = scalar_lea.vmem %s34_s12, 256  ;;  %p289_p12 = scmp.lt.s32.totalorder %s34_s12, %s34_s12 }
  0x1b   :  { %p285_p11 = scmp.ne.s32.totalorder %s34_s12, %s284_s20  ;;  %p290_p13 = scmp.lt.s32.totalorder %s284_s20, %s284_s20 }
  0x1d   :  { %p291_p0 = por %p290_p13, %p289_p12 }
  0x1f   :  { %p292_p1 = pnand %p291_p0, %p285_p11 }
  0x21   :  { %295 = shalt.err (!%p292_p1)
}
  0x22   :  { %39 = dma.hbm_to_vmem [thread:$0]  %s429_s1, 256, %s34_s12, [#allocation7], %s325_s7, %s325_s7, %s326_s8  }
  0x23   :  { %318 = dma.done.wait [#allocation4], 128  }
  0x24   :  { %319 = vsyncadd [#allocation4], 4294967168 }
  0x25   :  { %320 = dma.done.wait [#allocation7], 256  }
  0x26   :  { %321 = vsyncadd [#allocation7], 4294967040  ;;  %v328_v0 = vmov 0.0   ;;  %vm329_vm0 = vmmov 0   ;;  %v245_v1 = vld [vmem:[#allocation6] sm:$0xff]   ;;  %v246_v2 = vld [vmem:[#allocation6 + $0x8] sm:$0xff]  }
  0x27   :  { %228 = vmatprep.subr.bf16.mxu0 %v328_v0  ;;  %232 = vmatprep.mubr.msk.bf16.mxu0 %vm329_vm0, %v328_v0  ;;  %v247_v3 = vld [vmem:[#allocation3] sm:$0xff]   ;;  %vm83_vm1 = vcmask 261120   ;;  %s330_s24 = smov [#allocation8]  }
  0x28   :  { %229 = vmatpush3.bf16.msra.mxu0 %v245_v1  ;;  %v210_v4 = vld [vmem:[%s430_s2] ss:$0 sm:$0xff]  ;;  %s195_s25 = sshll.u32 %s330_s24, 4  ;;  %s196_s25 = int_to_ptr.vmem [resolvable:$true] %s195_s25 }
  0x29   :  { %230 = vmatprep.subr.bf16.mxu0 %v328_v0  ;;  %v217_v20 = vld [vmem:[%s431_s3] ss:$0 sm:$0xff]  ;;  %s296_s26 = scalar_lea.vmem %s196_s25, 128  ;;  %p301_p3 = scmp.lt.s32.totalorder %s196_s25, %s196_s25 }
  0x2a   :  { %p297_p2 = scmp.ne.s32.totalorder %s196_s25, %s296_s26  ;;  %p302_p4 = scmp.lt.s32.totalorder %s296_s26, %s296_s26 }
  0x2c   :  { %231 = vmatpush3.bf16.msra.mxu0 %v246_v2  ;;  %p303_p5 = por %p302_p4, %p301_p3 }
  0x2e   :  { %p304_p6 = pnand %p303_p5, %p297_p2 }
  0x2f   :  { %233 = vmatmul.mubr.msk.bf16.vlgmr.msra.gmra.mrb[0].mxu0 %vm83_vm1, %v247_v3 }
 0x102   :  { %v121_v5 = vpop.f32.mrb[0].mxu0 }
 0x103   :  { %v234_v6 = vpop.f32.mrb[1].mxu0  ;;  %v122_v8 = vadd.f32 %v210_v4, %v121_v5 }
 0x104   :  { %v124_v7 = vpop.f32.mrb[2].mxu0 }
 0x105   :  { %v125_v9 = vadd.f32 %v210_v4, %v124_v7  ;;  %v235_v10 = vpop.f32.mrb[3].mxu0 }
 0x107   :  { %v128_v11 = vpack.c.bf16 %v125_v9, %v122_v8 }
 0x109   :  { %v139_v12 = vunpack.c.h.bf16 %v128_v11  ;;  %224 = vst [vmem:[#allocation8] sm:$0xff] %v128_v11   ;;  %v138_v13 = vunpack.c.l.bf16 %v128_v11 }
 0x10b   :  { %v142_v14 = vmul.f32 0.70710677, %v138_v13  ;;  %v143_v15 = vmul.f32 0.70710677, %v139_v12  ;;  %v140_v18 = vmul.f32 0.5, %v138_v13  ;;  %v141_v23 = vmul.f32 0.5, %v139_v12 }
 0x10d   :  { %248 = verf.f32 %v142_v14 }
 0x10e   :  { %250 = verf.f32 %v143_v15 }
 0x117   :  { %v249_v16 = vpop.eup %248 }
 0x118   :  { %v251_v17 = vpop.eup %250  ;;  %v146_v19 = vadd.f32 1.0, %v249_v16 }
 0x119   :  { %v147_v21 = vadd.f32 1.0, %v251_v17 }
 0x11a   :  { %v148_v22 = vmul.f32 %v146_v19, %v140_v18 }
 0x11b   :  { %v149_v25 = vmul.f32 %v147_v21, %v141_v23 }
 0x11c   :  { %v157_v24 = vmul.f32 %v217_v20, %v148_v22 }
 0x11d   :  { %v158_v26 = vmul.f32 %v217_v20, %v149_v25 }
 0x11e   :  { %159 = vadd.xlane.f32.xlu0 %v157_v24 }
 0x122   :  { %161 = vadd.xlane.f32.xlu0 %v158_v26 }
 0x123   :  { %307 = shalt.err (!%p304_p6)
}
 0x124   :  { %s308_s28 = scalar_lea.hbm %s434_s6, 128 }
 0x125   :  { %p309_p7 = scmp.ne.s32.totalorder %s434_s6, %s308_s28  ;;  %p312_p8 = scmp.lt.u32.totalorder %s308_s28, %s434_s6 }
 0x127   :  { %p314_p9 = pnand %p312_p8, %p309_p7 }
 0x129   :  { %317 = shalt.err (!%p314_p9)
}
 0x12a   :  { %201 = dma.vmem_to_hbm [thread:$0]  %s196_s25, 128, %s434_s6, [#allocation5], %s325_s7, %s325_s7, %s326_s8   ;;  %v331_v27 = vmov 839922192   ;;  %v172_v29 = vlaneseq  ;;  %v332_v30 = vmov 1985246804  }
 0x12b   :  { %v170_v28 = vunpack.c.l.s4 %v331_v27  ;;  %v177_v31 = vunpack.c.l.s4 %v332_v30  ;;  %v164_v36 = vstv %s432_s4  ;;  %vm185_vm2 = vcmask 3072  }
 0x12c   :  { %v173_v34 = vshrl.u32 %v172_v29, 7 }
 0x12d   :  { %v171_v33 = vunpack.c.0.s8 %v170_v28  ;;  %v178_v35 = vunpack.c.0.s8 %v177_v31 }
 0x12f   :  { %v174_v39 = vsub.s32 %v171_v33, %v173_v34  ;;  %v181_v40 = vsub.s32 %v178_v35, %v173_v34 }
 0x1ab   :  { %v160_v32 = vpop.xlane.xlu0 %159 }
 0x1ac   :  { %v165_v38 = vadd.f32 %v164_v36, %v160_v32 }
 0x1af   :  { %v162_v37 = vpop.xlane.xlu0 %161 }
 0x1b0   :  { %v166_v41 = vadd.f32 %v164_v36, %v162_v37 }
 0x1b2   :  { %v167_v42 = vpack.c.bf16 %v166_v41, %v165_v38 }
 0x1b4   :  { %v175_v43 = vrot.slane %v167_v42, %v174_v39  ;;  %v182_v44 = vrot.slane %v167_v42, %v181_v40 }
 0x1b6   :  { %186 = vst.msk [vmem:[%s433_s5] sm:$0xf] %vm185_vm2, %v175_v43  ;;  %187 = vst.msk [vmem:[%s433_s5 + $0x4] sm:$0xf] %vm185_vm2, %v182_v44 }
 0x1b7   :  { %322 = dma.done.wait [#allocation5], 128  }
 0x1b8   :  { %323 = vsyncadd [#allocation5], 4294967168 }
 0x1b9   :  { %207 = vsyncpa [#allocation4], 1 }
 0x1ba   :  { %208 = vsyncpa [#allocation7], 1 }
 0x1bb   :  { %209 = vsyncpa [#allocation5], 1 }

</bundles_post_ra>
